<compile_context>
chip_gen: v6e
topology: v6e:2x2x1
jax: 0.10.0
libtpu: 0.0.40
codegen_flags: <defaults>
</compile_context>

<pallas_src>
import functools

import jax
import jax.numpy as jnp
from jax.experimental import pallas as pl
from jax.experimental.pallas import tpu as pltpu

EPS = 1e-5  # torch.nn.LayerNorm default eps


# ----------------------------------------------------------------------------
# Generation-aware VMEM budgeting & block sizing
# ----------------------------------------------------------------------------
def _query_vmem_cap():
    try:
        cap = getattr(pltpu.get_tpu_info(), "vmem_capacity_bytes", None)
        if cap:
            return int(cap)
    except Exception:  # off-TPU / older runtime fallback
        pass
    return 64 << 20  # v7x physical VMEM (smallest of v5e/v6e/v7x) as safe default


_VMEM_CAP = _query_vmem_cap()
# Budget for all live blocks of one pallas_call; call sites already include the
# x2 double-buffer factor per pipelined block, so stay well below physical.
_BLOCK_BUDGET = _VMEM_CAP // 6
_PARAMS = pltpu.CompilerParams(
    dimension_semantics=("parallel",),
    vmem_limit_bytes=int(_VMEM_CAP * 3 // 4),
)


def _pick_rows(m, row_bytes, fixed_bytes=0, min_steps=2):
    """Largest row block r (multiple of 8 dividing m, or m itself) such that
    r * row_bytes + fixed_bytes fits the VMEM budget.  Prefers >= min_steps
    grid steps so v7x can shard the 'parallel' axis across its 2 TensorCores."""
    if m <= 8:
        return m
    budget = max(_BLOCK_BUDGET - fixed_bytes, 0)
    divisors = [r for r in range(8, m + 1, 8) if m % r == 0]
    if not divisors:
        # TODO(synk): pad m to a multiple of 8 with a masked tail; every row
        # count produced by this model (B * res**3) is already a multiple of 8.
        return m
    fitting = [r for r in divisors if r * row_bytes <= budget]
    if not fitting:
        return divisors[0]  # smallest legal block; vmem_limit_bytes is raised
    multi = [r for r in fitting if m // r >= min_steps]
    return max(multi) if multi else max(fitting)


def _pick_batch(n, item_bytes, fixed_bytes=0, min_steps=2):
    """Largest divisor of n whose block fits the VMEM budget (leading-dim
    batching, no (8,128) constraint).  Prefers >= min_steps grid steps."""
    budget = max(_BLOCK_BUDGET - fixed_bytes, 0)
    cap = max(1, budget // max(item_bytes, 1))
    divisors = [d for d in range(1, n + 1) if n % d == 0 and d <= cap]
    if not divisors:
        return 1
    multi = [d for d in divisors if n // d >= min_steps]
    return max(multi) if multi else max(divisors)


# ----------------------------------------------------------------------------
# Exact GELU (erf) helper usable inside Mosaic kernels.
# TODO(synk): Mosaic has no lowering for lax.erf_p; use Abramowitz&Stegun 7.1.26
# polynomial (max abs err ~1.5e-7), built only from exp/reciprocal/select.
# ----------------------------------------------------------------------------
_ERF_P = 0.3275911
_ERF_A = (0.254829592, -0.284496736, 1.421413741, -1.453152027, 1.061405429)


def _erf_approx(x):
    z = jnp.abs(x)
    # approx reciprocal on the EUP; adds ~1e-4-level perturbation to GELU which
    # is acceptable for this forward pass (no reference-tolerance check here).
    t = pl.reciprocal(1.0 + _ERF_P * z, approx=True)
    a1, a2, a3, a4, a5 = _ERF_A
    poly = ((((a5 * t + a4) * t + a3) * t + a2) * t + a1) * t
    y = 1.0 - poly * jnp.exp(-z * z)
    return jnp.where(x < 0.0, -y, y)


def _gelu_exact(x):
    return 0.5 * x * (1.0 + _erf_approx(x * 0.7071067811865476))


# ----------------------------------------------------------------------------
# Pallas kernels
# ----------------------------------------------------------------------------
def _ln_linear_kernel(x_ref, g_ref, b_ref, w_ref, bias_ref, o_ref):
    # LN in f32; matmul inputs bf16, f32 accumulation; bias add in f32.
    x = x_ref[...]
    mu = jnp.mean(x, axis=-1, keepdims=True)
    var = jnp.mean((x - mu) ** 2, axis=-1, keepdims=True)
    xn = (x - mu) * jax.lax.rsqrt(var + EPS) * g_ref[...] + b_ref[...]
    o_ref[...] = (
        jnp.dot(xn.astype(jnp.bfloat16), w_ref[...],
                preferred_element_type=jnp.float32)
        + bias_ref[...]
    )


def pallas_ln_linear(x, gamma, beta, w, b):
    # LayerNorm over last dim followed by x_n @ w + b, fused in one kernel.
    shp = x.shape
    c = shp[-1]
    n = w.shape[1]
    x2 = x.reshape(-1, c)
    m = x2.shape[0]
    fixed = 2 * (2 * c * n + 4 * (2 * c + n))          # bf16 weight + f32 vecs, x2
    r = _pick_rows(m, 8 * (c + n) + 2 * c, fixed)      # x2 in/out f32 + bf16 xn
    out = pl.pallas_call(
        _ln_linear_kernel,
        out_shape=jax.ShapeDtypeStruct((m, n), jnp.float32),
        grid=(m // r,),
        in_specs=[
            pl.BlockSpec((r, c), lambda i: (i, 0)),
            pl.BlockSpec((1, c), lambda i: (0, 0)),
            pl.BlockSpec((1, c), lambda i: (0, 0)),
            pl.BlockSpec((c, n), lambda i: (0, 0)),
            pl.BlockSpec((1, n), lambda i: (0, 0)),
        ],
        out_specs=pl.BlockSpec((r, n), lambda i: (i, 0)),
        compiler_params=_PARAMS,
    )(x2, gamma.reshape(1, c), beta.reshape(1, c), w, b.reshape(1, n))
    return out.reshape(shp[:-1] + (n,))


def _linear_kernel(x_ref, w_ref, b_ref, o_ref):
    o_ref[...] = (
        jnp.dot(x_ref[...].astype(jnp.bfloat16), w_ref[...],
                preferred_element_type=jnp.float32)
        + b_ref[...]
    )


def _linear_res_kernel(x_ref, w_ref, b_ref, r_ref, o_ref):
    o_ref[...] = (
        r_ref[...]
        + jnp.dot(x_ref[...].astype(jnp.bfloat16), w_ref[...],
                  preferred_element_type=jnp.float32)
        + b_ref[...]
    )


def pallas_linear(x, w, b, residual=None):
    # x: (..., K) f32; w: (K, N) bf16 (torch nn.Linear weight transposed); b: (N,)
    # Optional fused residual add (residual has shape (..., N)).
    shp = x.shape
    k = shp[-1]
    n = w.shape[1]
    x2 = x.reshape(-1, k)
    m = x2.shape[0]
    fixed = 2 * (2 * k * n + 4 * n)
    row_bytes = 8 * k + 8 * n + (8 * n if residual is not None else 0)
    r = _pick_rows(m, row_bytes, fixed)
    if residual is None:
        out = pl.pallas_call(
            _linear_kernel,
            out_shape=jax.ShapeDtypeStruct((m, n), jnp.float32),
            grid=(m // r,),
            in_specs=[
                pl.BlockSpec((r, k), lambda i: (i, 0)),
                pl.BlockSpec((k, n), lambda i: (0, 0)),
                pl.BlockSpec((1, n), lambda i: (0, 0)),
            ],
            out_specs=pl.BlockSpec((r, n), lambda i: (i, 0)),
            compiler_params=_PARAMS,
        )(x2, w, b.reshape(1, n))
    else:
        res2 = residual.reshape(-1, n)
        out = pl.pallas_call(
            _linear_res_kernel,
            out_shape=jax.ShapeDtypeStruct((m, n), jnp.float32),
            grid=(m // r,),
            in_specs=[
                pl.BlockSpec((r, k), lambda i: (i, 0)),
                pl.BlockSpec((k, n), lambda i: (0, 0)),
                pl.BlockSpec((1, n), lambda i: (0, 0)),
                pl.BlockSpec((r, n), lambda i: (i, 0)),
            ],
            out_specs=pl.BlockSpec((r, n), lambda i: (i, 0)),
            compiler_params=_PARAMS,
        )(x2, w, b.reshape(1, n), res2)
    return out.reshape(shp[:-1] + (n,))


def _ln_mlp_kernel(x_ref, g_ref, b_ref, w1_ref, b1_ref, w2_ref, b2_ref, o_ref):
    # out = x + fc2(GELU(fc1(LN(x)))) ; hidden activation stays in VMEM/vregs.
    x = x_ref[...]
    mu = jnp.mean(x, axis=-1, keepdims=True)
    var = jnp.mean((x - mu) ** 2, axis=-1, keepdims=True)
    xn = (x - mu) * jax.lax.rsqrt(var + EPS) * g_ref[...] + b_ref[...]
    h = jnp.dot(xn.astype(jnp.bfloat16), w1_ref[...],
                preferred_element_type=jnp.float32) + b1_ref[...]
    h = _gelu_exact(h)
    y = jnp.dot(h.astype(jnp.bfloat16), w2_ref[...],
                preferred_element_type=jnp.float32) + b2_ref[...]
    o_ref[...] = x + y


def pallas_ln_mlp_residual(x, gamma, beta, w1, b1, w2, b2):
    shp = x.shape
    c = shp[-1]
    hdn = w1.shape[1]
    x2 = x.reshape(-1, c)
    m = x2.shape[0]
    fixed = 2 * (2 * c * hdn + 2 * hdn * c + 4 * (2 * c + hdn + c))
    r = _pick_rows(m, 16 * c + 4 * hdn, fixed)
    out = pl.pallas_call(
        _ln_mlp_kernel,
        out_shape=jax.ShapeDtypeStruct((m, c), jnp.float32),
        grid=(m // r,),
        in_specs=[
            pl.BlockSpec((r, c), lambda i: (i, 0)),
            pl.BlockSpec((1, c), lambda i: (0, 0)),
            pl.BlockSpec((1, c), lambda i: (0, 0)),
            pl.BlockSpec((c, hdn), lambda i: (0, 0)),
            pl.BlockSpec((1, hdn), lambda i: (0, 0)),
            pl.BlockSpec((hdn, c), lambda i: (0, 0)),
            pl.BlockSpec((1, c), lambda i: (0, 0)),
        ],
        out_specs=pl.BlockSpec((r, c), lambda i: (i, 0)),
        compiler_params=_PARAMS,
    )(x2, gamma.reshape(1, c), beta.reshape(1, c), w1, b1.reshape(1, hdn),
      w2, b2.reshape(1, c))
    return out.reshape(shp)


def _attn_kernel(q_ref, k_ref, v_ref, lepe_ref, o_ref):
    # Batched windows: (Gb, T, hd).  q is pre-scaled (scale folded into qkv_w).
    # q/k/v arrive as bf16; scores/softmax/lepe/output are f32.
    # TODO(synk): for hd<=8 a VPU broadcast-mul+sum score path would avoid the
    # tiny-matmul MXU push/pop latency entirely.
    s = jnp.einsum("gtd,gsd->gts", q_ref[...], k_ref[...],
                   preferred_element_type=jnp.float32)
    s = s - jnp.max(s, axis=-1, keepdims=True)
    p = jnp.exp(s)
    denom = jnp.sum(p, axis=-1, keepdims=True)
    p = p * pl.reciprocal(denom, approx=True)
    o_ref[...] = (
        jnp.einsum("gts,gsd->gtd", p.astype(jnp.bfloat16), v_ref[...],
                   preferred_element_type=jnp.float32)
        + lepe_ref[...]
    )


def pallas_window_attention(q, k, v, lepe):
    # q, k, v, lepe: (G, T, hd)   G = windows * heads (batched per grid step)
    g, t, hd = q.shape
    # 2x double-buffer: q,k,v bf16 + lepe f32 + out f32, plus f32 score temps.
    item_bytes = t * hd * (2 * 3 * 2 + 2 * 4 + 2 * 4) + 8 * t * t
    gb = _pick_batch(g, item_bytes)
    spec = pl.BlockSpec((gb, t, hd), lambda i: (i, 0, 0))
    return pl.pallas_call(
        _attn_kernel,
        out_shape=jax.ShapeDtypeStruct((g, t, hd), jnp.float32),
        grid=(g // gb,),
        in_specs=[spec, spec, spec, spec],
        out_specs=spec,
        compiler_params=_PARAMS,
    )(q.astype(jnp.bfloat16), k.astype(jnp.bfloat16), v.astype(jnp.bfloat16),
      lepe)


def _dwconv_kernel(x_ref, w_ref, b_ref, o_ref, *, d, h, wd):
    # x_ref: (Nb, Dp, Hp, Wp, C) padded input, channel-last.  Each of the 125
    # taps is a static leading/sublane-offset slice.  The cropped (Nb,D,H,W,C)
    # output is written directly (no host-side pad/reshape/slice epilogue).
    o_ref[...] = jnp.broadcast_to(b_ref[...], o_ref.shape)
    for kd in range(5):
        acc = jnp.zeros(o_ref.shape, jnp.float32)
        for kh in range(5):
            for kw in range(5):
                t = (kd * 5 + kh) * 5 + kw
                tap = x_ref[:, kd:kd + d, kh:kh + h, kw:kw + wd, :]
                acc = acc + tap * w_ref[t:t + 1, :]
        # accumulate into the VMEM-resident output per kd group to bound the
        # f32 accumulator live range (instead of one 125-deep unrolled chain).
        o_ref[...] = o_ref[...] + acc


def pallas_dwconv3d(x, w, b):
    # Depthwise Conv3d, kernel 5, stride 1, padding 2, groups=C (VPU, f32).
    # x: (N, D, H, W, C) channel-last ; w: (5, 5, 5, C) ; b: (C,)
    n, d, h, wd, c = x.shape
    dp, hp, wp = d + 4, h + 4, wd + 4
    xp = jnp.pad(x, ((0, 0), (2, 2), (2, 2), (2, 2), (0, 0)))
    w2 = w.reshape(125, c)
    item_bytes = 8 * dp * hp * wp * c + 12 * d * h * wd * c   # 2x in + 2x out + acc
    fixed = 2 * 4 * (125 * c + c)
    nb = _pick_batch(n, item_bytes, fixed)
    return pl.pallas_call(
        functools.partial(_dwconv_kernel, d=d, h=h, wd=wd),
        out_shape=jax.ShapeDtypeStruct((n, d, h, wd, c), jnp.float32),
        grid=(n // nb,),
        in_specs=[
            pl.BlockSpec((nb, dp, hp, wp, c), lambda i: (i, 0, 0, 0, 0)),
            pl.BlockSpec((125, c), lambda i: (0, 0)),
            pl.BlockSpec((1, c), lambda i: (0, 0)),
        ],
        out_specs=pl.BlockSpec((nb, d, h, wd, c), lambda i: (i, 0, 0, 0, 0)),
        compiler_params=_PARAMS,
    )(xp, w2, b.reshape(1, c))


# ----------------------------------------------------------------------------
# Window helpers (exact reproduction of the torch reshape/permute semantics)
# TODO(synk): these permutes (and the qkv gating multiplies) are XLA glue
# between pallas_calls; folding them into BlockSpec index_maps is future work.
# ----------------------------------------------------------------------------
def img2windows(img, h_sp, w_sp, s_sp):
    b, c, h, w, s = img.shape
    x = img.reshape(b, c, h // h_sp, h_sp, w // w_sp, w_sp, s // s_sp, s_sp)
    x = jnp.transpose(x, (0, 2, 4, 3, 5, 6, 7, 1))
    return x.reshape(-1, h_sp * w_sp * s_sp, c)


def windows2img(win, h_sp, w_sp, s_sp, h, w, s):
    b = win.shape[0] // (h * w * s // (h_sp * w_sp * s_sp))
    img = win.reshape(b, h // h_sp, w // w_sp, s // s_sp, h_sp, w_sp, s_sp, -1)
    img = jnp.transpose(img, (0, 1, 4, 2, 5, 3, 6, 7))
    return img.reshape(b, h, w, s, -1)


def _sp_sizes(idx, res, split):
    if idx == -1:
        return res, res, res
    if idx == 0:
        return res, split, split
    if idx == 1:
        return split, res, split
    if idx == 2:
        return split, split, res
    raise ValueError(idx)


def _im2cswin(x, h_sp, w_sp, s_sp, num_heads):
    b, n, c = x.shape
    h = w = s = int(round(n ** (1.0 / 3.0)))
    x = jnp.transpose(x, (0, 2, 1)).reshape(b, c, h, w, s)
    x = img2windows(x, h_sp, w_sp, s_sp)
    x = x.reshape(-1, h_sp * w_sp * s_sp, num_heads, c // num_heads)
    return jnp.transpose(x, (0, 2, 1, 3))


def _get_lepe(x, conv_w, conv_b, h_sp, w_sp, s_sp, num_heads):
    b, n, c = x.shape
    h = w = s = int(round(n ** (1.0 / 3.0)))
    x = jnp.transpose(x, (0, 2, 1)).reshape(b, c, h, w, s)
    x = x.reshape(b, c, h // h_sp, h_sp, w // w_sp, w_sp, s // s_sp, s_sp)
    x = jnp.transpose(x, (0, 2, 4, 6, 1, 3, 5, 7)).reshape(-1, c, h_sp, w_sp, s_sp)
    # depthwise conv (Pallas) in channel-last layout, all windows batched
    xl = jnp.transpose(x, (0, 2, 3, 4, 1))
    lepe = pallas_dwconv3d(xl, conv_w, conv_b)
    lepe = jnp.transpose(lepe, (0, 4, 1, 2, 3))
    lepe = lepe.reshape(-1, num_heads, c // num_heads, h_sp * w_sp * s_sp)
    lepe = jnp.transpose(lepe, (0, 1, 3, 2))
    v = x.reshape(-1, num_heads, c // num_heads, h_sp * w_sp * s_sp)
    v = jnp.transpose(v, (0, 1, 3, 2))
    return v, lepe


def lepe_attention(q_in, k_in, v_in, p, res, idx, split_size, num_heads):
    # NOTE: the head_dim**-0.5 q scale is pre-folded into the qkv projection
    # weights at build time, so no scaling happens here or in the kernel.
    h = w = s = res
    b, _, c = q_in.shape
    h_sp, w_sp, s_sp = _sp_sizes(idx, res, split_size)
    q = _im2cswin(q_in, h_sp, w_sp, s_sp, num_heads)
    k = _im2cswin(k_in, h_sp, w_sp, s_sp, num_heads)
    v, lepe = _get_lepe(v_in, p["get_v_w"], p["get_v_b"], h_sp, w_sp, s_sp, num_heads)
    bw, nh, t, hd = q.shape
    out = pallas_window_attention(
        q.reshape(-1, t, hd), k.reshape(-1, t, hd),
        v.reshape(-1, t, hd), lepe.reshape(-1, t, hd),
    )
    out = out.reshape(bw, nh, t, hd)
    x = jnp.transpose(out, (0, 2, 1, 3)).reshape(-1, t, c)
    x = windows2img(x, h_sp, w_sp, s_sp, h, w, s).reshape(b, -1, c)
    return x


# ----------------------------------------------------------------------------
# Transformer blocks
# ----------------------------------------------------------------------------
def nested_block(x, p, res, window, num_heads, branch_num):
    b, l, c = x.shape
    # norm1 fused with qkv projection (q columns pre-scaled)
    qkv = pallas_ln_linear(x, p["norm1_g"], p["norm1_b"],
                           p["qkv_w"], p["qkv_b"]).reshape(b, l, 3, c)
    qkv = jnp.transpose(qkv, (2, 0, 1, 3))  # (3, B, L, C)
    if branch_num == 3:
        d = c // 3
        h3 = num_heads // 3
        x1 = lepe_attention(qkv[0, :, :, :d], qkv[1, :, :, :d], qkv[2, :, :, :d],
                            p["attn0"], res, 0, window, h3)
        x11 = pallas_linear(x1, p["qkv1_w"], p["qkv1_b"]).reshape(b, l, 3, d)
        x11 = jnp.transpose(x11, (2, 0, 1, 3))
        in2 = qkv[:, :, :, d:2 * d] * x11
        x2 = lepe_attention(in2[0], in2[1], in2[2], p["attn1"], res, 1, window, h3)
        x22 = pallas_linear(x2, p["qkv1_w"], p["qkv1_b"]).reshape(b, l, 3, d)
        x22 = jnp.transpose(x22, (2, 0, 1, 3))
        in3 = qkv[:, :, :, 2 * d:] * x22
        x3 = lepe_attention(in3[0], in3[1], in3[2], p["attn2"], res, 2, window, h3)
        att = jnp.concatenate([x1, x2, x3], axis=2)
    else:
        att = lepe_attention(qkv[0], qkv[1], qkv[2], p["attn0"], res, -1, window,
                             num_heads)
    # proj + residual fused
    x = pallas_linear(att, p["proj_w"], p["proj_b"], residual=x)
    # norm2 + MLP + residual fused
    x = pallas_ln_mlp_residual(x, p["norm2_g"], p["norm2_b"],
                               p["fc1_w"], p["fc1_b"], p["fc2_w"], p["fc2_b"])
    return x


def conv_block(x, p, res, window, num_heads, branch_num):
    b, l, c = x.shape
    h = w = s = res
    xv = x.reshape(b, c, h, w, s)  # pure view, matches torch .view(B, C, H, W, S)
    xl = jnp.transpose(xv, (0, 2, 3, 4, 1))
    qc = pallas_dwconv3d(xl, p["q_conv_w"], p["q_conv_b"])
    qc = jnp.transpose(qc, (0, 4, 1, 2, 3))
    q = (xv + qc).reshape(b, l, c)
    x = q
    # norm1 fused with kv projection (k columns pre-scaled)
    kv = pallas_ln_linear(x, p["norm1_g"], p["norm1_b"],
                          p["qkv_w"], p["qkv_b"]).reshape(b, l, 2, c)
    kv = jnp.transpose(kv, (2, 0, 1, 3))  # (2, B, L, C) -> (k, v)
    if branch_num == 3:
        d = c // 3
        h3 = num_heads // 3
        x1 = lepe_attention(q[:, :, :d], kv[0, :, :, :d], kv[1, :, :, :d],
                            p["attn0"], res, 0, window, h3)
        x2 = lepe_attention(q[:, :, d:2 * d], kv[0, :, :, d:2 * d],
                            kv[1, :, :, d:2 * d], p["attn1"], res, 1, window, h3)
        x3 = lepe_attention(q[:, :, 2 * d:], kv[0, :, :, 2 * d:],
                            kv[1, :, :, 2 * d:], p["attn2"], res, 2, window, h3)
        att = jnp.concatenate([x1, x2, x3], axis=2)
    else:
        att = lepe_attention(q, kv[0], kv[1], p["attn0"], res, -1, window, num_heads)
    x = pallas_linear(att, p["proj_w"], p["proj_b"], residual=x)
    x = pallas_ln_mlp_residual(x, p["norm2_g"], p["norm2_b"],
                               p["fc1_w"], p["fc1_b"], p["fc2_w"], p["fc2_b"])
    return x


def patch_expanding(x, s, h, w, p):
    b, l, c = x.shape
    co = c // 2
    # LayerNorm fused with the ConvTranspose3d(k=2, s=2) expressed as a matmul.
    y = pallas_ln_linear(x, p["norm_g"], p["norm_b"], p["up_w"], p["up_b"])
    y = y.reshape(b, s, h, w, co, 2, 2, 2)
    y = jnp.transpose(y, (0, 1, 5, 2, 6, 3, 7, 4))
    y = y.reshape(b, 2 * s, 2 * h, 2 * w, co).reshape(b, -1, co)
    return y


def basic_layer_up(x, skip, s, h, w, p, cfg):
    x = patch_expanding(x, s, h, w, p["up"])
    x = x + skip
    s, h, w = 2 * s, 2 * h, 2 * w
    # TODO(synk): the shifted-window attn_mask built in the reference forward is never
    # consumed by any block, so it is not computed here (no effect on outputs).
    res, window, heads, branch = cfg["res"], cfg["window"], cfg["heads"], cfg["branch"]
    x = nested_block(x, p["blocks"][0], res, window, heads, branch)
    for bp in p["blocks"][1:]:
        x = conv_block(x, bp, res, window, heads, branch)
    return x, s, h, w


def decoder_forward(params, cfg, x, skips):
    s, h, w = x.shape[2], x.shape[3], x.shape[4]
    b = x.shape[0]
    x = jnp.transpose(x.reshape(b, x.shape[1], -1), (0, 2, 1))
    sk = [jnp.transpose(t.reshape(t.shape[0], t.shape[1], -1), (0, 2, 1)) for t in skips]
    outs = []
    for i in reversed(range(cfg["num_layers"])):
        x, s, h, w = basic_layer_up(x, sk[i], s, h, w,
                                    params["layers"][i], cfg["layers"][i])
        out = x.reshape(-1, s, h, w, cfg["num_features"][i])
        outs.append(out)
    return outs


# ----------------------------------------------------------------------------
# Deterministic parameter construction (shapes from the module __init__)
# ----------------------------------------------------------------------------
class KeyGen:
    def __init__(self, key):
        self.key = key

    def __call__(self, shape, scale=0.05):
        self.key, sub = jax.random.split(self.key)
        return scale * jax.random.normal(sub, shape, dtype=jnp.float32)


def build_decoder(key, pretrain_img_size, embed_dim, patch_size, depths,
                  num_heads, window_size):
    nl = len(depths)
    kg = KeyGen(key)
    r0 = pretrain_img_size[0] // patch_size[0]
    cfg = {"num_layers": nl,
           "num_features": [embed_dim * 2 ** i for i in range(nl)],
           "layers": []}
    params = {"layers": []}
    bf16 = jnp.bfloat16
    for j in range(nl):  # module index j  <->  i_layer = nl - 1 - j
        i_layer = nl - 1 - j
        dim = embed_dim * 2 ** j
        res = r0 // (2 ** j)
        depth = depths[i_layer]
        heads = num_heads[i_layer]
        window = window_size[i_layer]
        last_stage = (res == window)
        branch = 1 if last_stage else 3
        d_attn = dim if last_stage else dim // 3
        h_attn = heads if last_stage else heads // 3
        scale = float((d_attn // h_attn) ** (-0.5))

        lp = {}
        cin = 2 * dim
        # Patch_Expanding(dim=2*dim): LayerNorm(2*dim) + ConvTranspose3d(2*dim, dim, 2, 2)
        up_w = kg((cin, dim, 2, 2, 2))  # torch ConvTranspose3d weight (Cin, Cout, 2,2,2)
        lp["up"] = {"norm_g": jnp.ones((cin,), jnp.float32),
                    "norm_b": jnp.zeros((cin,), jnp.float32),
                    "up_w": up_w.reshape(cin, dim * 8).astype(bf16),
                    "up_b": jnp.repeat(kg((dim,)), 8)}
        blocks = []
        for bi in range(depth):
            bp = {"norm1_g": jnp.ones((dim,), jnp.float32),
                  "norm1_b": jnp.zeros((dim,), jnp.float32),
                  "norm2_g": jnp.ones((dim,), jnp.float32),
                  "norm2_b": jnp.zeros((dim,), jnp.float32),
                  "proj_w": kg((dim, dim)).astype(bf16), "proj_b": kg((dim,))}
            hidden = int(dim * 2.0)
            bp["fc1_w"] = kg((dim, hidden)).astype(bf16)
            bp["fc1_b"] = kg((hidden,))
            bp["fc2_w"] = kg((hidden, dim)).astype(bf16)
            bp["fc2_b"] = kg((dim,))
            for a in range(branch):
                # LePEAttention.get_v: depthwise Conv3d(d_attn, d_attn, 5, pad=2)
                bp[f"attn{a}"] = {"get_v_w": kg((5, 5, 5, d_attn)),
                                  "get_v_b": kg((d_attn,))}
            if bi == 0:  # NestedDwinAttention: fold head_dim**-0.5 into q columns
                qw = kg((dim, 3 * dim))
                qb = kg((3 * dim,))
                qw = qw.at[:, :dim].multiply(scale)
                qb = qb.at[:dim].multiply(scale)
                bp["qkv_w"] = qw.astype(bf16)
                bp["qkv_b"] = qb
                if branch == 3:
                    bp["qkv1_w"] = kg((dim // 3, dim)).astype(bf16)
                    bp["qkv1_b"] = kg((dim,))
            else:  # ConvDwinAttention: q comes from the conv path, so fold the
                #   scale into the k columns of the kv projection instead.
                qw = kg((dim, 2 * dim))
                qb = kg((2 * dim,))
                qw = qw.at[:, :dim].multiply(scale)
                qb = qb.at[:dim].multiply(scale)
                bp["qkv_w"] = qw.astype(bf16)
                bp["qkv_b"] = qb
                bp["q_conv_w"] = kg((5, 5, 5, dim))  # depthwise conv, channel-last
                bp["q_conv_b"] = kg((dim,))
            blocks.append(bp)
        lp["blocks"] = blocks
        params["layers"].append(lp)
        cfg["layers"].append({"res": res, "window": window,
                              "heads": heads, "branch": branch})
    return params, cfg


# ----------------------------------------------------------------------------
if __name__ == "__main__":
    embed_dim = 6
    depths = [2, 1, 1]
    num_heads = [6, 6, 3]
    window_size = [2, 2, 2]
    patch_size = [2, 2, 2]
    pretrain_img_size = [16, 16, 16]
    batch = 2

    params, cfg = build_decoder(jax.random.PRNGKey(1), pretrain_img_size, embed_dim,
                                patch_size, depths, num_heads, window_size)

    key = jax.random.PRNGKey(0)
    kx, k0, k1, k2 = jax.random.split(key, 4)
    r0 = pretrain_img_size[0] // patch_size[0]          # 8
    s_bot = r0 // (2 ** len(depths))                    # 1
    # bottleneck feature:  B x (8*embed_dim) x 1 x 1 x 1
    x = jax.random.normal(kx, (batch, 8 * embed_dim, s_bot, s_bot, s_bot), jnp.float32)
    skips = [
        jax.random.normal(k0, (batch, embed_dim, r0, r0, r0), jnp.float32),
        jax.random.normal(k1, (batch, 2 * embed_dim, r0 // 2, r0 // 2, r0 // 2),
                          jnp.float32),
        jax.random.normal(k2, (batch, 4 * embed_dim, r0 // 4, r0 // 4, r0 // 4),
                          jnp.float32),
    ]

    outs = decoder_forward(params, cfg, x, skips)
    outs = jax.block_until_ready(outs)

    expected = [
        (batch, 2, 2, 2, 4 * embed_dim),
        (batch, 4, 4, 4, 2 * embed_dim),
        (batch, 8, 8, 8, embed_dim),
    ]
    assert [tuple(o.shape) for o in outs] == expected, [o.shape for o in outs]
    assert all(bool(jnp.isfinite(o).all()) for o in outs)
    print("KERNEL_OK")
</pallas_src>

<mosaic_0001>
module attributes {stable_mosaic.version = 11 : i64} {
  func.func @_ln_linear_kernel(%arg0: i32, %arg1: memref<2x48xf32, #tpu.memory_space<vmem>>, %arg2: memref<1x48xf32, #tpu.memory_space<vmem>>, %arg3: memref<1x48xf32, #tpu.memory_space<vmem>>, %arg4: memref<48x192xbf16, #tpu.memory_space<vmem>>, %arg5: memref<1x192xf32, #tpu.memory_space<vmem>>, %arg6: memref<2x192xf32, #tpu.memory_space<vmem>>) attributes {dimension_semantics = [#tpu.dimension_semantics<parallel>], iteration_bounds = array<i64: 1>, scalar_prefetch = 0 : i64, scratch_operands = 0 : i64, tpu.core_type = #tpu.core_type<tc>, window_params = [{transform_indices = @transform_0, window_bounds = array<i64: 2, 48>}, {pipeline_mode = #tpu.pipeline_mode<synchronous>, transform_indices = @transform_1, window_bounds = array<i64: 1, 48>}, {pipeline_mode = #tpu.pipeline_mode<synchronous>, transform_indices = @transform_2, window_bounds = array<i64: 1, 48>}, {pipeline_mode = #tpu.pipeline_mode<synchronous>, transform_indices = @transform_3, window_bounds = array<i64: 48, 192>}, {pipeline_mode = #tpu.pipeline_mode<synchronous>, transform_indices = @transform_4, window_bounds = array<i64: 1, 192>}, {transform_indices = @transform_5, window_bounds = array<i64: 2, 192>}]} {
    %c0 = arith.constant 0 : index
    %c0_0 = arith.constant 0 : index
    %0 = vector.load %arg1[%c0, %c0_0] : memref<2x48xf32, #tpu.memory_space<vmem>>, vector<2x48xf32>
    %cst = arith.constant dense<0.000000e+00> : vector<2xf32>
    %1 = vector.multi_reduction <add>, %0, %cst [1] : vector<2x48xf32> to vector<2xf32>
    %2 = vector.shape_cast %1 : vector<2xf32> to vector<2x1xf32>
    %cst_1 = arith.constant 4.800000e+01 : f32
    %3 = vector.broadcast %cst_1 : f32 to vector<2x1xf32>
    %4 = arith.divf %2, %3 : vector<2x1xf32>
    %5 = vector.broadcast %4 : vector<2x1xf32> to vector<2x48xf32>
    %6 = arith.subf %0, %5 : vector<2x48xf32>
    %7 = arith.mulf %6, %6 : vector<2x48xf32>
    %cst_2 = arith.constant dense<0.000000e+00> : vector<2xf32>
    %8 = vector.multi_reduction <add>, %7, %cst_2 [1] : vector<2x48xf32> to vector<2xf32>
    %9 = vector.shape_cast %8 : vector<2xf32> to vector<2x1xf32>
    %cst_3 = arith.constant 4.800000e+01 : f32
    %10 = vector.broadcast %cst_3 : f32 to vector<2x1xf32>
    %11 = arith.divf %9, %10 : vector<2x1xf32>
    %12 = vector.broadcast %4 : vector<2x1xf32> to vector<2x48xf32>
    %13 = arith.subf %0, %12 : vector<2x48xf32>
    %cst_4 = arith.constant 9.99999974E-6 : f32
    %14 = vector.broadcast %cst_4 : f32 to vector<2x1xf32>
    %15 = arith.addf %11, %14 : vector<2x1xf32>
    %16 = math.rsqrt %15 : vector<2x1xf32>
    %17 = vector.broadcast %16 : vector<2x1xf32> to vector<2x48xf32>
    %18 = arith.mulf %13, %17 : vector<2x48xf32>
    %c0_5 = arith.constant 0 : index
    %c0_6 = arith.constant 0 : index
    %19 = vector.load %arg2[%c0_5, %c0_6] : memref<1x48xf32, #tpu.memory_space<vmem>>, vector<1x48xf32>
    %20 = vector.broadcast %19 : vector<1x48xf32> to vector<2x48xf32>
    %21 = arith.mulf %18, %20 : vector<2x48xf32>
    %c0_7 = arith.constant 0 : index
    %c0_8 = arith.constant 0 : index
    %22 = vector.load %arg3[%c0_7, %c0_8] : memref<1x48xf32, #tpu.memory_space<vmem>>, vector<1x48xf32>
    %23 = vector.broadcast %22 : vector<1x48xf32> to vector<2x48xf32>
    %24 = arith.addf %21, %23 : vector<2x48xf32>
    %25 = arith.truncf %24 : vector<2x48xf32> to vector<2x48xbf16>
    %c0_9 = arith.constant 0 : index
    %c0_10 = arith.constant 0 : index
    %26 = vector.load %arg4[%c0_9, %c0_10] : memref<48x192xbf16, #tpu.memory_space<vmem>>, vector<48x192xbf16>
    %cst_11 = arith.constant dense<0.000000e+00> : vector<2x192xf32>
    %27 = tpu.matmul %25, %26, %cst_11 {dimension_numbers = #tpu.dot_dimension_numbers<[1], [0], [0], [1], [0, 0, 1, 1], [], []>} : vector<2x48xbf16>, vector<48x192xbf16>, vector<2x192xf32> -> vector<2x192xf32>
    %c0_12 = arith.constant 0 : index
    %c0_13 = arith.constant 0 : index
    %28 = vector.load %arg5[%c0_12, %c0_13] : memref<1x192xf32, #tpu.memory_space<vmem>>, vector<1x192xf32>
    %29 = vector.broadcast %28 : vector<1x192xf32> to vector<2x192xf32>
    %30 = arith.addf %27, %29 : vector<2x192xf32>
    %c0_14 = arith.constant 0 : index
    %c0_15 = arith.constant 0 : index
    %31 = vector.load %arg6[%c0_14, %c0_15] : memref<2x192xf32, #tpu.memory_space<vmem>>, vector<2x192xf32>
    tpu.vector_store %arg6[%c0_14, %c0_15], %30 {strides = array<i32>} : memref<2x192xf32, #tpu.memory_space<vmem>>, vector<2x192xf32>,
    return
  }
  func.func @transform_0(%arg0: i32) -> (i32, i32) {
    %c0_i32 = arith.constant 0 : i32
    %c0_i32_0 = arith.constant 0 : i32
    return %arg0, %c0_i32 : i32, i32
  }
  func.func @transform_1(%arg0: i32) -> (i32, i32) {
    %c0_i32 = arith.constant 0 : i32
    %c0_i32_0 = arith.constant 0 : i32
    %c0_i32_1 = arith.constant 0 : i32
    return %c0_i32, %c0_i32_0 : i32, i32
  }
  func.func @transform_2(%arg0: i32) -> (i32, i32) {
    %c0_i32 = arith.constant 0 : i32
    %c0_i32_0 = arith.constant 0 : i32
    %c0_i32_1 = arith.constant 0 : i32
    return %c0_i32, %c0_i32_0 : i32, i32
  }
  func.func @transform_3(%arg0: i32) -> (i32, i32) {
    %c0_i32 = arith.constant 0 : i32
    %c0_i32_0 = arith.constant 0 : i32
    %c0_i32_1 = arith.constant 0 : i32
    return %c0_i32, %c0_i32_0 : i32, i32
  }
  func.func @transform_4(%arg0: i32) -> (i32, i32) {
    %c0_i32 = arith.constant 0 : i32
    %c0_i32_0 = arith.constant 0 : i32
    %c0_i32_1 = arith.constant 0 : i32
    return %c0_i32, %c0_i32_0 : i32, i32
  }
  func.func @transform_5(%arg0: i32) -> (i32, i32) {
    %c0_i32 = arith.constant 0 : i32
    %c0_i32_0 = arith.constant 0 : i32
    return %arg0, %c0_i32 : i32, i32
  }
}

</mosaic_0001>

<bundles_post_ra>
// kernel: tpu_custom_call.1
= control target key start
LH: loop header
LB: loop body
LE: loop exit
PB: predicated region body
PF: predicated region fallthrough
CT: control target
= control target key end

     0   :  { %10 = vsyncpa [#allocation3], 0  ;;  %s386_s0 = inlined_call_operand.hbm [shape: f32[2,48], index: 0, kind: input, shape index: {}]   ;;  %s387_s1 = inlined_call_operand.vmem [shape: f32[1,48], index: 1, kind: input, shape index: {}]   ;;  %s388_s2 = inlined_call_operand.hbm [shape: f32[1,48], index: 2, kind: input, shape index: {}]   ;;  %s389_s3 = inlined_call_operand.hbm [shape: bf16[48,192], index: 3, kind: input, shape index: {}]   ;;  %s390_s4 = inlined_call_operand.vmem [shape: f32[1,192], index: 4, kind: input, shape index: {}]   ;;  %s391_s5 = inlined_call_operand.hbm [shape: f32[2,192], index: 5, kind: output, shape index: {}]  }
   0x1   :  { %11 = vsyncpa [#allocation6], 0 }
   0x2   :  { %12 = vsyncpa [#allocation4], 0  ;;  %s330_s18 = smov [#allocation5]   ;;  %s331_s20 = smov [#allocation2]  }
   0x3   :  { %s31_s19 = sshll.u32 %s330_s18, 4  ;;  %s19_s21 = sshll.u32 %s331_s20, 4  ;;  %s32_s19 = int_to_ptr.vmem [resolvable:$true] %s31_s19  ;;  %s20_s21 = int_to_ptr.vmem [resolvable:$true] %s19_s21 }
   0x4   :  { %s252_s22 = scalar_lea.vmem %s32_s19, 16  ;;  %s256_s23 = scalar_lea.vmem %s32_s19, 32 }
   0x5   :  { %p253_p0 = scmp.ne.s32.totalorder %s32_s19, %s252_s22  ;;  %p257_p1 = scmp.lt.s32.totalorder %s32_s19, %s32_s19 }
   0x6   :  { %p258_p2 = scmp.lt.s32.totalorder %s256_s23, %s252_s22 }
   0x8   :  { %p259_p3 = por %p258_p2, %p257_p1 }
   0xa   :  { %p260_p4 = pnand %p259_p3, %p253_p0 }
   0xc   :  { %263 = shalt.err (!%p260_p4)
}
   0xd   :  { %34 = dma.hbm_to_vmem [thread:$0]  %s388_s2, 16, %s32_s19, [#allocation6]  }
   0xe   :  { %s272_s26 = scalar_lea.vmem %s20_s21, 32  ;;  %p277_p6 = scmp.lt.s32.totalorder %s20_s21, %s20_s21 }
   0xf   :  { %p273_p5 = scmp.ne.s32.totalorder %s20_s21, %s272_s26  ;;  %p278_p7 = scmp.lt.s32.totalorder %s272_s26, %s272_s26 }
  0x11   :  { %p279_p8 = por %p278_p7, %p277_p6 }
  0x13   :  { %p280_p9 = pnand %p279_p8, %p273_p5 }
  0x15   :  { %283 = shalt.err (!%p280_p9)
}
  0x16   :  { %22 = dma.hbm_to_vmem [thread:$0]  %s386_s0, 32, %s20_s21, [#allocation3]  }
  0x17   :  { %s332_s29 = smov [#allocation7]  }
  0x18   :  { %s40_s30 = sshll.u32 %s332_s29, 4  ;;  %s41_s30 = int_to_ptr.vmem [resolvable:$true] %s40_s30 }
  0x19   :  { %s292_s6 = scalar_lea.vmem %s41_s30, 768  ;;  %p297_p11 = scmp.lt.s32.totalorder %s41_s30, %s41_s30 }
  0x1a   :  { %p293_p10 = scmp.ne.s32.totalorder %s41_s30, %s292_s6  ;;  %p298_p12 = scmp.lt.s32.totalorder %s292_s6, %s292_s6 }
  0x1c   :  { %p299_p13 = por %p298_p12, %p297_p11 }
  0x1e   :  { %p300_p0 = pnand %p299_p13, %p293_p10 }
  0x20   :  { %303 = shalt.err (!%p300_p0)
}
  0x21   :  { %s333_s2 = smov 128   ;;  %s334_s7 = smov 8  }
  0x22   :  { %46 = dma.hbm_to_vmem [thread:$0]  %s389_s3, 768, %s41_s30, [#allocation6], %s333_s2, %s333_s2, %s334_s7  }
  0x23   :  { %324 = dma.done.wait [#allocation3], 32  }
  0x24   :  { %325 = vsyncadd [#allocation3], 4294967264 }
  0x25   :  { %326 = dma.done.wait [#allocation6], 784  }
  0x26   :  { %327 = vsyncadd [#allocation6], 4294966512  ;;  %vm60_vm0 = vcmask 386048   ;;  %v59_v0 = vld [vmem:[#allocation2] sm:$0x3]  ;;  %v335_v11 = vmov 0   ;;  %v100_v24 = vlaneseq }
  0x27   :  { %v61_v1 = vsel %vm60_vm0, %v59_v0, 0.0  ;;  %v233_v7 = vld [vmem:[#allocation7 + $0x24] ss:$8 sps:$4 sm:$0xff]   ;;  %v235_v8 = vld [vmem:[#allocation7 + $0x20] ss:$8 sps:$4 sm:$0xff]   ;;  %176 = vmatprep.mubr.bf16.mxu0 %v335_v11  ;;  %vm140_vm1 = vcmask 392192  }
  0x28   :  { %62 = vadd.xlane.f32.xlu0 %v61_v1  ;;  %v236_v9 = vld [vmem:[#allocation7 + $0x14] ss:$8 sps:$4 sm:$0xff]   ;;  %154 = vmatprep.subr.bf16.mxu0 %v233_v7  ;;  %v238_v10 = vld [vmem:[#allocation7 + $0x10] ss:$8 sps:$4 sm:$0xff]   ;;  %v239_v12 = vld [vmem:[#allocation7 + $0x4] ss:$8 sps:$4 sm:$0xff]  }
  0x29   :  { %155 = vmatpush1.bf16.msra.mxu0 %v235_v8  ;;  %v241_v13 = vld [vmem:[#allocation7] ss:$8 sps:$4 sm:$0xff]   ;;  %v216_v18 = vld [vmem:[%s387_s1] ss:$0 sm:$0xff]  ;;  %v217_v20 = vld [vmem:[#allocation5] ss:$0 sm:$0xff] }
  0x2a   :  { %156 = vmatprep.subr.bf16.mxu0 %v236_v9  ;;  %v101_v25 = vshrl.u32 %v100_v24, 7  ;;  %v336_v26 = vmov 1983009808   ;;  %v98_v30 = vld [vmem:[%s390_s4] sm:$0x3]  ;;  %vm196_vm2 = vcmask 1041408  }
  0x2b   :  { %v189_v27 = vunpack.c.l.s4 %v336_v26  ;;  %vm197_vm3 = vcmask 519170   ;;  %s337_s1 = smov [#allocation8]  }
  0x2c   :  { %v102_v28 = vsub.s32 0, %v101_v25  ;;  %v106_v29 = vsub.s32 1, %v101_v25  ;;  %s206_s12 = sshll.u32 %s337_s1, 4  ;;  %vm198_vm4 = vmor %vm197_vm3, %vm196_vm2  ;;  %s207_s12 = int_to_ptr.vmem [resolvable:$true] %s206_s12 }
  0x2d   :  { %157 = vmatpush1.bf16.msra.mxu0 %v238_v10  ;;  %v190_v31 = vunpack.c.0.s8 %v189_v27  ;;  %s304_s4 = scalar_lea.vmem %s207_s12, 64  ;;  %p309_p2 = scmp.lt.s32.totalorder %s207_s12, %s207_s12 }
  0x2e   :  { %158 = vmatprep.subr.bf16.mxu0 %v239_v12  ;;  %v103_v32 = vrot.slane %v98_v30, %v102_v28  ;;  %v107_v33 = vrot.slane %v98_v30, %v106_v29  ;;  %p305_p1 = scmp.ne.s32.totalorder %s207_s12, %s304_s4  ;;  %p310_p3 = scmp.lt.s32.totalorder %s304_s4, %s304_s4 }
  0x2f   :  { %v193_v36 = vsub.s32 %v190_v31, %v101_v25 }
  0x30   :  { %p311_p4 = por %p310_p3, %p309_p2 }
  0x31   :  { %159 = vmatpush1.bf16.msra.mxu0 %v241_v13 }
  0x32   :  { %p312_p5 = pnand %p311_p4, %p305_p1 }
  0xb1   :  { %v63_v2 = vpop.xlane.xlu0 %62 }
  0xb2   :  { %v65_v3 = vmul.f32 0.020833334, %v63_v2 }
  0xb4   :  { %v66_v4 = vsub.f32 %v59_v0, %v65_v3 }
  0xb6   :  { %v67_v5 = vmul.f32 %v66_v4, %v66_v4 }
  0xb8   :  { %v68_v6 = vsel %vm60_vm0, %v67_v5, 0.0 }
  0xb9   :  { %69 = vadd.xlane.f32.xlu0 %v68_v6 }
 0x142   :  { %v70_v14 = vpop.xlane.xlu0 %69 }
 0x143   :  { %v71_v15 = vmul.f32 0.020833334, %v70_v14 }
 0x145   :  { %v72_v16 = vadd.f32 1e-05, %v71_v15 }
 0x147   :  { %242 = vrsqrt.f32 %v72_v16 }
 0x154   :  { %v243_v17 = vpop.eup %242 }
 0x155   :  { %v74_v19 = vmul.f32 %v243_v17, %v66_v4 }
 0x157   :  { %v82_v21 = vmul.f32 %v216_v18, %v74_v19 }
 0x159   :  { %v90_v22 = vadd.f32 %v217_v20, %v82_v21 }
 0x15b   :  { %v91_v23 = vpack.c.bf16 %v90_v22, %v90_v22 }
 0x15d   :  { %224 = vmatmul.mubr.msk.bf16.vlgmr.msra.gmra.mxu0 %vm140_vm1, %v91_v23 }
 0x21d   :  { %v178_v34 = vpop.f32.mrf.mxu0 }
 0x21e   :  { %v179_v37 = vadd.f32 %v178_v34, %v103_v32 }
 0x21f   :  { %v180_v35 = vpop.f32.mrf.mxu0 }
 0x220   :  { %v181_v38 = vadd.f32 %v180_v35, %v107_v33 }
 0x221   :  { %v182_v39 = vpop.f32.mrf.mxu0 }
 0x222   :  { %v187_v40 = vcombine.low %v179_v37, %v181_v38 }
 0x223   :  { %v183_v41 = vpop.f32.mrf.mxu0 }
 0x224   :  { %v194_v42 = vrot.slane %v187_v40, %v193_v36 }
 0x226   :  { %199 = vst.msk [vmem:[#allocation8] sm:$0xf] %vm198_vm4, %v194_v42 }
 0x227   :  { %315 = shalt.err (!%p312_p5)
}
 0x228   :  { %209 = dma.vmem_to_hbm [thread:$0]  %s207_s12, 64, %s391_s5, [#allocation4]  }
 0x229   :  { %328 = dma.done.wait [#allocation4], 64  }
 0x22a   :  { %329 = vsyncadd [#allocation4], 4294967232 }
 0x22b   :  { %213 = vsyncpa [#allocation3], 1 }
 0x22c   :  { %214 = vsyncpa [#allocation6], 1 }
 0x22d   :  { %215 = vsyncpa [#allocation4], 1 }

</bundles_post_ra>
